<compile_context>
chip_gen: v5e
topology: v5e:2x2
jax: 0.10.0
libtpu: 0.0.40
codegen_flags: <defaults>
</compile_context>

<pallas_src>
import functools

import jax
import jax.numpy as jnp
from jax.experimental import pallas as pl
from jax.experimental.pallas import tpu as pltpu


HIDDEN = 100    # fixed by the module (__init__: self.hidden = 100)
ROW_TILE = 8    # sublane tile: max batch rows per kernel call


def _round_up(n, m):
    return pl.cdiv(n, m) * m


# ----------------------------------------------------------------------------
# Pallas kernel: fused fc1 + ReLU + fc2 + softmax (single grid point)
# ----------------------------------------------------------------------------
def _policy_mlp_kernel(x_ref, w1_ref, b1_ref, w2_ref, b2_ref, o_ref):
    x = x_ref[...]                                               # (R, Sp) bf16
    # fc1 + ReLU: bf16 operands, f32 MXU accumulation, f32 elementwise.
    h = jnp.dot(x, w1_ref[...], preferred_element_type=jnp.float32) + b1_ref[...]
    h = jnp.maximum(h, 0.0)
    # fc2: padded action lanes receive logit ~ -1e30 via the baked-in bias.
    logits = jnp.dot(h.astype(jnp.bfloat16), w2_ref[...],
                     preferred_element_type=jnp.float32) + b2_ref[...]
    # Softmax over the lane axis; padded lanes underflow to exactly 0.
    m = jnp.max(logits, axis=-1, keepdims=True)
    e = jnp.exp(logits - m)
    s = jnp.sum(e, axis=-1, keepdims=True)
    o_ref[...] = e * pl.reciprocal(s, approx=True)


# ----------------------------------------------------------------------------
# Preprocess (JAX port of Policy.preprocess), one-time weight prep, wrapper
# ----------------------------------------------------------------------------
def preprocess(state):
    """JAX port of Policy.preprocess. state: (H, W, C) float32 -> (S,)."""
    s = jnp.sum(state, axis=2)
    s = jnp.where(s == 70.0, 0.0, s)          # state[state == 70] = 0
    s = jnp.where(s != 0.0, 1.0, s)           # state[state != 0] = 1
    s = s[::5, ::5]                           # stride-5 downsample
    s = s[:, 3:38].astype(jnp.float32)        # column crop
    return s.reshape(-1)                      # flatten -> (state_space,)


def prepare_params(w1, b1, w2, b2):
    """One-time prep: pad / transpose / bf16-cast torch.nn.Linear weights.

    w1: (hidden, S), b1: (hidden,), w2: (A, hidden), b2: (A,).
    Returns padded (Sp, Hp) / (1, Hp) / (Hp, Ap) / (1, Ap) arrays; padded
    action lanes of b2 are set to -1e30 so they are masked out of softmax.
    """
    hid, s_dim = w1.shape
    act = w2.shape[0]
    Sp = _round_up(s_dim, 128)
    Hp = _round_up(hid, 128)
    Ap = _round_up(act, 128)

    w1_p = jnp.zeros((Sp, Hp), jnp.bfloat16).at[:s_dim, :hid].set(
        w1.T.astype(jnp.bfloat16))
    b1_p = jnp.zeros((1, Hp), jnp.float32).at[0, :hid].set(b1)
    w2_p = jnp.zeros((Hp, Ap), jnp.bfloat16).at[:hid, :act].set(
        w2.T.astype(jnp.bfloat16))
    b2_p = jnp.full((1, Ap), -1e30, jnp.float32).at[0, :act].set(b2)
    return w1_p, b1_p, w2_p, b2_p


@functools.partial(jax.jit, static_argnames=("action_space",))
def policy_forward(states, w1_p, b1_p, w2_p, b2_p, *, action_space):
    """Batched forward. states: (B, H, W, C) with B <= ROW_TILE.

    Returns (B, action_space) action probabilities.
    """
    B = states.shape[0]
    x = jax.vmap(preprocess)(states)          # (B, S) of 0/1 -> exact in bf16
    s_dim = x.shape[1]
    Sp = w1_p.shape[0]
    Ap = w2_p.shape[1]
    R = _round_up(B, ROW_TILE)

    x_p = jnp.zeros((R, Sp), jnp.bfloat16).at[:B, :s_dim].set(
        x.astype(jnp.bfloat16))

    out = pl.pallas_call(
        _policy_mlp_kernel,
        out_shape=jax.ShapeDtypeStruct((R, Ap), jnp.float32),
        in_specs=[pl.BlockSpec(memory_space=pltpu.MemorySpace.VMEM)] * 5,
        out_specs=pl.BlockSpec(memory_space=pltpu.MemorySpace.VMEM),
    )(x_p, w1_p, b1_p, w2_p, b2_p)

    return out[:B, :action_space]             # (B, A) probabilities


# ----------------------------------------------------------------------------
# Pure-JAX references for correctness checks
# ----------------------------------------------------------------------------
def policy_forward_ref(states, w1, b1, w2, b2, *, bf16_matmul=False):
    x = jax.vmap(preprocess)(states)
    if bf16_matmul:   # mirror the kernel's bf16-operand / f32-accumulate matmuls
        x = x.astype(jnp.bfloat16).astype(jnp.float32)
        w1 = w1.astype(jnp.bfloat16).astype(jnp.float32)
        w2 = w2.astype(jnp.bfloat16).astype(jnp.float32)
    h = jnp.maximum(x @ w1.T + b1, 0.0)
    if bf16_matmul:
        h = h.astype(jnp.bfloat16).astype(jnp.float32)
    logits = h @ w2.T + b2
    return jax.nn.softmax(logits, axis=-1)


if __name__ == "__main__":
    # Small image: (40, 40, 3) -> preprocess -> 8 rows x 5 cols -> state_space=40
    H_img, W_img, C_img = 40, 40, 3
    action_space = 6
    batch = 4                                  # <= ROW_TILE real states per call

    key = jax.random.PRNGKey(0)
    k_img, k_w1, k_w2 = jax.random.split(key, 3)

    states = jax.random.randint(
        k_img, (batch, H_img, W_img, C_img), 0, 60).astype(jnp.float32)
    state_space = preprocess(states[0]).shape[0]   # = 40 for this image size

    # Deterministic init matching Policy.init_weights: normal weights, zero bias.
    w1 = jax.random.normal(k_w1, (HIDDEN, state_space), jnp.float32)
    b1 = jnp.zeros((HIDDEN,), jnp.float32)
    w2 = jax.random.normal(k_w2, (action_space, HIDDEN), jnp.float32)
    b2 = jnp.zeros((action_space,), jnp.float32)

    # One-time weight prep (hoisted out of the per-call path).
    params = prepare_params(w1, b1, w2, b2)

    probs = policy_forward(states, *params, action_space=action_space)
    probs = jax.block_until_ready(probs)

    assert probs.shape == (batch, action_space)

    # Apples-to-apples check vs. a reference using the same bf16-rounded matmuls.
    ref_bf16 = policy_forward_ref(states, w1, b1, w2, b2, bf16_matmul=True)
    assert jnp.allclose(probs, ref_bf16, atol=5e-3, rtol=5e-3)
    assert jnp.allclose(jnp.sum(probs, axis=-1), 1.0, atol=5e-3)

    # Loose sanity check against the full-f32 reference (bf16 matmul tolerance).
    ref_f32 = policy_forward_ref(states, w1, b1, w2, b2, bf16_matmul=False)
    assert jnp.max(jnp.abs(probs - ref_f32)) < 0.05

    print("KERNEL_OK")
</pallas_src>

<mosaic_0001>
module attributes {stable_mosaic.version = 11 : i64} {
  func.func @_policy_mlp_kernel(%arg0: memref<8x128xbf16, #tpu.memory_space<vmem>>, %arg1: memref<128x128xbf16, #tpu.memory_space<vmem>>, %arg2: memref<1x128xf32, #tpu.memory_space<vmem>>, %arg3: memref<128x128xbf16, #tpu.memory_space<vmem>>, %arg4: memref<1x128xf32, #tpu.memory_space<vmem>>, %arg5: memref<8x128xf32, #tpu.memory_space<vmem>>) attributes {dimension_semantics = [], scalar_prefetch = 0 : i64, scratch_operands = 0 : i64, tpu.core_type = #tpu.core_type<tc>} {
    %c0 = arith.constant 0 : index
    %c0_0 = arith.constant 0 : index
    %0 = vector.load %arg0[%c0, %c0_0] : memref<8x128xbf16, #tpu.memory_space<vmem>>, vector<8x128xbf16>
    %c0_1 = arith.constant 0 : index
    %c0_2 = arith.constant 0 : index
    %1 = vector.load %arg1[%c0_1, %c0_2] : memref<128x128xbf16, #tpu.memory_space<vmem>>, vector<128x128xbf16>
    %cst = arith.constant dense<0.000000e+00> : vector<8x128xf32>
    %2 = tpu.matmul %0, %1, %cst {dimension_numbers = #tpu.dot_dimension_numbers<[1], [0], [0], [1], [0, 0, 1, 1], [], []>} : vector<8x128xbf16>, vector<128x128xbf16>, vector<8x128xf32> -> vector<8x128xf32>
    %c0_3 = arith.constant 0 : index
    %c0_4 = arith.constant 0 : index
    %3 = vector.load %arg2[%c0_3, %c0_4] : memref<1x128xf32, #tpu.memory_space<vmem>>, vector<1x128xf32>
    %4 = vector.broadcast %3 : vector<1x128xf32> to vector<8x128xf32>
    %5 = arith.addf %2, %4 : vector<8x128xf32>
    %cst_5 = arith.constant 0.000000e+00 : f32
    %6 = vector.broadcast %cst_5 : f32 to vector<8x128xf32>
    %7 = arith.maximumf %5, %6 : vector<8x128xf32>
    %8 = arith.truncf %7 : vector<8x128xf32> to vector<8x128xbf16>
    %c0_6 = arith.constant 0 : index
    %c0_7 = arith.constant 0 : index
    %9 = vector.load %arg3[%c0_6, %c0_7] : memref<128x128xbf16, #tpu.memory_space<vmem>>, vector<128x128xbf16>
    %cst_8 = arith.constant dense<0.000000e+00> : vector<8x128xf32>
    %10 = tpu.matmul %8, %9, %cst_8 {dimension_numbers = #tpu.dot_dimension_numbers<[1], [0], [0], [1], [0, 0, 1, 1], [], []>} : vector<8x128xbf16>, vector<128x128xbf16>, vector<8x128xf32> -> vector<8x128xf32>
    %c0_9 = arith.constant 0 : index
    %c0_10 = arith.constant 0 : index
    %11 = vector.load %arg4[%c0_9, %c0_10] : memref<1x128xf32, #tpu.memory_space<vmem>>, vector<1x128xf32>
    %12 = vector.broadcast %11 : vector<1x128xf32> to vector<8x128xf32>
    %13 = arith.addf %10, %12 : vector<8x128xf32>
    %cst_11 = arith.constant dense<0xFF800000> : vector<8xf32>
    %14 = vector.multi_reduction <maximumf>, %13, %cst_11 [1] : vector<8x128xf32> to vector<8xf32>
    %15 = vector.shape_cast %14 : vector<8xf32> to vector<8x1xf32>
    %16 = vector.broadcast %15 : vector<8x1xf32> to vector<8x128xf32>
    %17 = arith.subf %13, %16 : vector<8x128xf32>
    %18 = math.exp %17 : vector<8x128xf32>
    %cst_12 = arith.constant dense<0.000000e+00> : vector<8xf32>
    %19 = vector.multi_reduction <add>, %18, %cst_12 [1] : vector<8x128xf32> to vector<8xf32>
    %20 = vector.shape_cast %19 : vector<8xf32> to vector<8x1xf32>
    %21 = tpu.reciprocal %20 {approx = true} : vector<8x1xf32> -> vector<8x1xf32>
    %22 = vector.broadcast %21 : vector<8x1xf32> to vector<8x128xf32>
    %23 = arith.mulf %18, %22 : vector<8x128xf32>
    %c0_13 = arith.constant 0 : index
    %c0_14 = arith.constant 0 : index
    %24 = vector.load %arg5[%c0_13, %c0_14] : memref<8x128xf32, #tpu.memory_space<vmem>>, vector<8x128xf32>
    tpu.vector_store %arg5[%c0_13, %c0_14], %23 {strides = array<i32>} : memref<8x128xf32, #tpu.memory_space<vmem>>, vector<8x128xf32>,
    return
  }
}

</mosaic_0001>

<bundles_post_ra>
// kernel: policy_forward.1
= control target key start
LH: loop header
LB: loop body
LE: loop exit
PB: predicated region body
PF: predicated region fallthrough
CT: control target
= control target key end

     0   :  { %s375_s1 = inlined_call_operand.vmem [shape: bf16[128,128], index: 1, kind: input, shape index: {}]   ;;  %s376_s3 = inlined_call_operand.vmem [shape: bf16[128,128], index: 3, kind: input, shape index: {}]   ;;  %s377_s2 = inlined_call_operand.vmem [shape: f32[1,128], index: 2, kind: input, shape index: {}]   ;;  %s378_s0 = inlined_call_operand.vmem [shape: bf16[8,128], index: 0, kind: input, shape index: {}]   ;;  %s379_s4 = inlined_call_operand.vmem [shape: f32[1,128], index: 4, kind: input, shape index: {}]   ;;  %s380_s5 = inlined_call_operand.vmem [shape: f32[8,128], index: 5, kind: output, shape index: {}]  }
   0x1   :  { %v270_v0 = vld [vmem:[%s375_s1 + $0x38] sm:$0xff]  ;;  %v269_v1 = vld [vmem:[%s375_s1 + $0x30] sm:$0xff]  ;;  %v268_v4 = vld [vmem:[%s375_s1 + $0x28] sm:$0xff] }
   0x2   :  { %89 = vmatpush.bf16.msra.mxu0 %v270_v0  ;;  %v278_v2 = vld [vmem:[%s376_s3 + $0x38] sm:$0xff]  ;;  %v277_v3 = vld [vmem:[%s376_s3 + $0x30] sm:$0xff]  ;;  %v276_v5 = vld [vmem:[%s376_s3 + $0x28] sm:$0xff] }
   0x3   :  { %172 = vmatpush.bf16.msra.mxu1 %v278_v2  ;;  %v267_v6 = vld [vmem:[%s375_s1 + $0x20] sm:$0xff]  ;;  %v266_v8 = vld [vmem:[%s375_s1 + $0x18] sm:$0xff]  ;;  %v265_v10 = vld [vmem:[%s375_s1 + $0x10] sm:$0xff] }
   0x4   :  { %v275_v7 = vld [vmem:[%s376_s3 + $0x20] sm:$0xff]  ;;  %v274_v9 = vld [vmem:[%s376_s3 + $0x18] sm:$0xff]  ;;  %v273_v11 = vld [vmem:[%s376_s3 + $0x10] sm:$0xff] }
   0x5   :  { %v264_v12 = vld [vmem:[%s375_s1 + $0x8] sm:$0xff]  ;;  %v263_v13 = vld [vmem:[%s375_s1] sm:$0xff] }
   0x6   :  { %90 = vmatpush.bf16.msra.mxu0 %v269_v1  ;;  %v20_v14 = vld [vmem:[%s378_s0] sm:$0xf]  ;;  %v272_v15 = vld [vmem:[%s376_s3 + $0x8] sm:$0xff] }
   0x7   :  { %173 = vmatpush.bf16.msra.mxu1 %v277_v3  ;;  %v271_v16 = vld [vmem:[%s376_s3] sm:$0xff] }
   0x8   :  { %v279_v17 = vld [vmem:[%s377_s2] ss:$0 sm:$0xff] }
   0x9   :  { %v280_v23 = vld [vmem:[%s379_s4] ss:$0 sm:$0xff] }
   0xa   :  { %91 = vmatpush.bf16.msra.mxu0 %v268_v4 }
   0xb   :  { %174 = vmatpush.bf16.msra.mxu1 %v276_v5 }
   0xe   :  { %92 = vmatpush.bf16.msra.mxu0 %v267_v6 }
   0xf   :  { %175 = vmatpush.bf16.msra.mxu1 %v275_v7 }
  0x12   :  { %93 = vmatpush.bf16.msra.mxu0 %v266_v8 }
  0x13   :  { %176 = vmatpush.bf16.msra.mxu1 %v274_v9 }
  0x16   :  { %94 = vmatpush.bf16.msra.mxu0 %v265_v10 }
  0x17   :  { %177 = vmatpush.bf16.msra.mxu1 %v273_v11 }
  0x1a   :  { %95 = vmatpush.bf16.msra.mxu0 %v264_v12 }
  0x1b   :  { %178 = vmatpush.bf16.msra.mxu1 %v272_v15 }
  0x1e   :  { %96 = vmatpush.bf16.msra.mxu0 %v263_v13 }
  0x1f   :  { %179 = vmatpush.bf16.msra.mxu1 %v271_v16 }
  0x21   :  { %97 = vmatmul.bf16.vlgmr.msra.gmra.mxu0 %v20_v14 }
  0x9e   :  { %v98_v18 = vpop.f32.mrf.mxu0 }
  0x9f   :  { %v99_v19 = vadd.f32 %v279_v17, %v98_v18 }
  0xa1   :  { %v102_v20 = vmax.f32 %v99_v19, 0.0 }
  0xa3   :  { %v103_v21 = vpack.c.bf16 %v102_v20, %v102_v20 }
  0xa5   :  { %180 = vmatmul.bf16.vlgmr.msra.gmra.mxu1 %v103_v21 }
  0xa6   :  { %v100_v22 = vpop.f32.mrf.mxu0 }
 0x122   :  { %v181_v24 = vpop.f32.mrf.mxu1 }
 0x123   :  { %v182_v25 = vadd.f32 %v280_v23, %v181_v24 }
 0x125   :  { %185 = vmax.xlane.f32.xlu0 %v182_v25 }
 0x12a   :  { %v183_v26 = vpop.f32.mrf.mxu1 }
 0x198   :  { %v186_v27 = vpop.xlane.xlu0 %185 }
 0x199   :  { %v187_v28 = vsub.f32 %v182_v25, %v186_v27 }
 0x19b   :  { %v188_v29 = vmul.f32 1.442695, %v187_v28 }
 0x19d   :  { %281 = vpow2.f32 %v188_v29 }
 0x1a3   :  { %v282_v30 = vpop.eup %281 }
 0x1a4   :  { %190 = vadd.xlane.f32.xlu0 %v282_v30 }
 0x217   :  { %v191_v31 = vpop.xlane.xlu0 %190 }
 0x218   :  { %283 = vrcp.f32 %v191_v31 }
 0x21e   :  { %v284_v32 = vpop.eup %283 }
 0x21f   :  { %v193_v33 = vmul.f32 %v284_v32, %v282_v30 }
 0x221   :  { %194 = vst [vmem:[%s380_s5] sm:$0xff] %v193_v33 }

</bundles_post_ra>
